<compile_context>
chip_gen: v7x
topology: tpu7x:2x2x1
jax: 0.10.0
libtpu: 0.0.40
codegen_flags: <defaults>
</compile_context>

<pallas_src>
import functools
import math

import jax
import jax.numpy as jnp
from jax.experimental import pallas as pl
from jax.experimental.pallas import tpu as pltpu

BN_EPS = 1e-5
KSIZE = 9
LANE = 128

# Per-grid-step working-set budget and scoped-VMEM limit.  48 MiB is below every
# generation's physical VMEM (v7x: 64 MiB, v5e/v6e: 128 MiB); the ~24 MiB working-set
# target leaves headroom for double-buffering and compiler temporaries.
VMEM_STEP_BUDGET = 24 << 20
VMEM_LIMIT_BYTES = 48 << 20


def _round_up(a, b):
    return (a + b - 1) // b * b


# ----------------------------------------------------------------------------- #
# In-kernel math helpers
# ----------------------------------------------------------------------------- #
def _activation(h, name):
    if name == "gelu":
        # tanh-form GELU: the heavy transcendental goes to the EUP slot instead of
        # ~13-16 VALU FMAs of the erf rational.  Max deviation from exact erf-GELU
        # is ~3e-3, well inside the bf16-matmul tolerance used below.
        u = 0.7978845608028654 * h * (1.0 + 0.044715 * (h * h))
        return 0.5 * h * (1.0 + jnp.tanh(u))
    elif name == "relu":
        return jnp.maximum(h, 0.0)
    elif name == "swish":
        return h * jax.nn.sigmoid(h)
    else:
        raise ValueError(f"Unrecognized activation fn: {name}")


# ----------------------------------------------------------------------------- #
# Pallas kernel: all ResNet blocks fused, one batch-tile (flattened onto lanes)
# per grid step.  Layout inside the kernel: (C, W) with W = B_tile * Lpad and the
# batch segments concatenated along the 128-wide lane axis.
# ----------------------------------------------------------------------------- #
def resnet_kernel(x_ref,                     # (C, W) f32
                  s1_ref, t1_ref,            # (nblk, C, 1) f32  -- folded BN1
                  w1_ref, b1_ref,            # (nblk, Cb, 9*C) bf16 / (nblk, Cb, 1) f32 (BN2 folded in)
                  w2_ref, b2_ref,            # (nblk, C, Cb) bf16 / (nblk, C, 1) f32
                  o_ref,                     # (C, W) f32
                  im2col_ref,                # VMEM scratch (9*C, W) bf16
                  *, dilations, act):
    c, w = x_ref.shape
    # NOTE: no zero fill of im2col_ref.  Stale / uninitialized tail columns of the
    # shifted row-blocks only ever contribute to output columns that lie beyond each
    # batch segment's valid output length, which the wrapper slices away.

    h = x_ref[...]                                 # (C, W) f32
    for i, d in enumerate(dilations):
        # BatchNorm1d (eval) folded to a single FMA, then activation (f32 VPU + EUP)
        h = h * s1_ref[i] + t1_ref[i]
        h = _activation(h, act)

        # im2col: 9 lane-shifted copies stacked along channels, stored in bf16 (half
        # the vst/vld bytes of f32).  Shift s = k*d < Lpad <= W, so the shifted read
        # never wraps and every *needed* column reads valid data (see run_blocks()).
        h16 = h.astype(jnp.bfloat16)
        im2col_ref[0:c, :] = h16
        for k in range(1, KSIZE):
            s = k * d
            im2col_ref[k * c:(k + 1) * c, : w - s] = h16[:, s:]

        # conv1 (dilated, VALID) with BN2 folded in: one MXU matmul, K = 9*C, bf16 in,
        # f32 accumulation.
        z = jnp.dot(w1_ref[i], im2col_ref[...],
                    preferred_element_type=jnp.float32) + b1_ref[i]
        z = _activation(z, act)

        # conv2 (1x1) == channel-mixing matmul
        h = jnp.dot(w2_ref[i], z.astype(jnp.bfloat16),
                    preferred_element_type=jnp.float32) + b2_ref[i]

    o_ref[...] = h.astype(o_ref.dtype)


def run_blocks(x, params_list, dilations, act):
    """Run a sequence of ProteinResNetBlocks fused in one pallas_call.
    x: (N, C, L_in) float32 -> (N, C, L_in - 8*sum(dilations)) float32."""
    n, c, l_in = x.shape
    l_out = l_in - (KSIZE - 1) * sum(dilations)
    assert l_out > 0, "sequence too short for these dilations"

    lpad = _round_up(l_in, LANE)

    # Garbage-column safety invariant.  For block i with dilation d_i the valid
    # input length is valid_in_i = l_in - 8*sum(d_0..d_{i-1}) <= l_in <= lpad, and
    # every output column j < valid_out_i = valid_in_i - 8*d_i only ever reads
    # im2col columns at local positions j + k*d_i < valid_in_i <= lpad.  Hence the
    # shifted copies never cross a batch-segment boundary and all stale/garbage
    # columns feed only output columns >= the per-segment valid output length,
    # which `out[:n, :, :l_out]` slices away.
    assert l_in <= lpad and (KSIZE - 1) * max(dilations) < lpad

    # ---- per-step tile width W from a VMEM byte budget (not a fixed lane count).
    # Per lane of W (bytes): in + out tiles f32 double-buffered (2*2*4*C each side),
    # bf16 im2col scratch (2*9*C), plus headroom for live intermediates (~16*C).
    bytes_per_lane = c * (4 * 2 * 2 + 2 * KSIZE + 16)
    w_max_lanes = max(LANE, (VMEM_STEP_BUDGET // bytes_per_lane) // LANE * LANE)
    b_cap = max(1, w_max_lanes // lpad)
    b_tile = min(n, b_cap)
    # Keep >= 2 grid steps when the batch allows: v7x has 2 TensorCores per chip and
    # "parallel" grid axes are sharded across them; a single step would idle one TC.
    if n >= 2 and b_tile > (n + 1) // 2:
        b_tile = (n + 1) // 2
    nb = _round_up(n, b_tile)
    w = b_tile * lpad

    # ---- layout: (N, C, L) -> zero-pad -> (C, NB*Lpad), batch flattened onto lanes
    xp = jnp.pad(x.astype(jnp.float32), ((0, nb - n), (0, 0), (0, lpad - l_in)))
    x_flat = jnp.transpose(xp, (1, 0, 2)).reshape(c, nb * lpad)

    # ---- fold BN (eval) into scale/shift + conv weights (wrapper-side, free)
    s1s, t1s, w1s, b1s, w2s, b2s = [], [], [], [], [], []
    for p in params_list:
        s1 = p["bn1_gamma"] / jnp.sqrt(p["bn1_var"] + BN_EPS)
        t1 = p["bn1_beta"] - p["bn1_mean"] * s1
        s2 = p["bn2_gamma"] / jnp.sqrt(p["bn2_var"] + BN_EPS)
        cb = p["w1"].shape[0]
        # (Cb, C, 9) -> (Cb, 9, C) -> (Cb, 9*C): column index = k*C + i, matches im2col
        # rows.  NOTE: folding s2 into bf16 weights loses precision if bn2_var is tiny;
        # acceptable here (var >= eps-bounded running stats).
        w1m = jnp.transpose(p["w1"], (0, 2, 1)).reshape(cb, KSIZE * c) * s2[:, None]
        b1f = (p["b1"] - p["bn2_mean"]) * s2 + p["bn2_beta"]
        s1s.append(s1); t1s.append(t1); w1s.append(w1m); b1s.append(b1f)
        w2s.append(p["w2"][:, :, 0]); b2s.append(p["b2"])

    col = lambda arrs: jnp.stack(arrs).astype(jnp.float32)[..., None]
    s1_a, t1_a, b1_a, b2_a = col(s1s), col(t1s), col(b1s), col(b2s)
    w1_a = jnp.stack(w1s).astype(jnp.bfloat16)     # (nblk, Cb, 9*C)
    w2_a = jnp.stack(w2s).astype(jnp.bfloat16)     # (nblk, C, Cb)

    full = lambda shape: pl.BlockSpec(shape, lambda b, _s=shape: (0,) * len(_s))
    kernel = functools.partial(resnet_kernel,
                               dilations=tuple(int(d) for d in dilations), act=act)
    out_flat = pl.pallas_call(
        kernel,
        out_shape=jax.ShapeDtypeStruct((c, nb * lpad), jnp.float32),
        grid=(nb // b_tile,),
        in_specs=[
            pl.BlockSpec((c, w), lambda b: (0, b)),
            full(s1_a.shape), full(t1_a.shape),
            full(w1_a.shape), full(b1_a.shape),
            full(w2_a.shape), full(b2_a.shape),
        ],
        out_specs=pl.BlockSpec((c, w), lambda b: (0, b)),
        scratch_shapes=[pltpu.VMEM((KSIZE * c, w), jnp.bfloat16)],
        compiler_params=pltpu.CompilerParams(
            dimension_semantics=("parallel",),
            vmem_limit_bytes=VMEM_LIMIT_BYTES),
    )(x_flat, s1_a, t1_a, w1_a, b1_a, w2_a, b2_a)

    out = out_flat.reshape(c, nb, lpad).transpose(1, 0, 2)
    return out[:n, :, :l_out]


# ----------------------------------------------------------------------------- #
# ResNet forward (matches ResNet.forward control flow)
# ----------------------------------------------------------------------------- #
def block_dilation(cfg, layer_index):
    shifted = layer_index - cfg["first_dilated_layer"] + 1
    return int(max(1, cfg["dilation_rate"] ** shifted))


def resnet_forward(hidden_states, blocks_params, cfg, input_mask=None):
    assert input_mask is None  # TODO(synk): mask multiply before each conv not wired up
    act = cfg["hidden_act"]
    dils = [block_dilation(cfg, i) for i in range(len(blocks_params))]

    if cfg["output_hidden_states"]:
        all_hidden_states = ()
        for p, d in zip(blocks_params, dils):
            all_hidden_states = all_hidden_states + (hidden_states,)
            hidden_states = run_blocks(hidden_states, [p], [d], act)
        all_hidden_states = all_hidden_states + (hidden_states,)
        return (hidden_states, all_hidden_states)

    hidden_states = run_blocks(hidden_states, blocks_params, dils, act)
    return (hidden_states,)


# ----------------------------------------------------------------------------- #
# Deterministic parameter init (shapes follow ProteinResNetBlock.__init__)
# ----------------------------------------------------------------------------- #
def init_params(key, cfg):
    c = cfg["hidden_size"]
    cb = math.floor(cfg["resnet_bottleneck_factor"] * c)
    params = []
    for i in range(cfg["nblocks"]):
        ks = jax.random.split(jax.random.fold_in(key, i), 12)
        params.append(dict(
            w1=0.1 * jax.random.normal(ks[0], (cb, c, KSIZE), jnp.float32),
            b1=0.05 * jax.random.normal(ks[1], (cb,), jnp.float32),
            w2=0.1 * jax.random.normal(ks[2], (c, cb, 1), jnp.float32),
            b2=0.05 * jax.random.normal(ks[3], (c,), jnp.float32),
            bn1_gamma=1.0 + 0.1 * jax.random.normal(ks[4], (c,), jnp.float32),
            bn1_beta=0.1 * jax.random.normal(ks[5], (c,), jnp.float32),
            bn1_mean=0.1 * jax.random.normal(ks[6], (c,), jnp.float32),
            bn1_var=0.5 + jax.random.uniform(ks[7], (c,), jnp.float32),
            bn2_gamma=1.0 + 0.1 * jax.random.normal(ks[8], (cb,), jnp.float32),
            bn2_beta=0.1 * jax.random.normal(ks[9], (cb,), jnp.float32),
            bn2_mean=0.1 * jax.random.normal(ks[10], (cb,), jnp.float32),
            bn2_var=0.5 + jax.random.uniform(ks[11], (cb,), jnp.float32),
        ))
    return params


# ----------------------------------------------------------------------------- #
# Pure-JAX reference (f32 XLA convs, exact erf-GELU) for correctness checking
# ----------------------------------------------------------------------------- #
def _ref_block(x, p, d):
    def bn(h, g, b, m, v):
        br = lambda a: a[None, :, None]
        return (h - br(m)) / jnp.sqrt(br(v) + BN_EPS) * br(g) + br(b)

    def gelu(h):
        return h * 0.5 * (1.0 + jax.scipy.special.erf(h / math.sqrt(2.0)))

    h = gelu(bn(x, p["bn1_gamma"], p["bn1_beta"], p["bn1_mean"], p["bn1_var"]))
    h = jax.lax.conv_general_dilated(h, p["w1"], window_strides=(1,), padding="VALID",
                                     rhs_dilation=(d,), dimension_numbers=("NCH", "OIH", "NCH"))
    h = h + p["b1"][None, :, None]
    h = gelu(bn(h, p["bn2_gamma"], p["bn2_beta"], p["bn2_mean"], p["bn2_var"]))
    h = jax.lax.conv_general_dilated(h, p["w2"], window_strides=(1,), padding="VALID",
                                     dimension_numbers=("NCH", "OIH", "NCH"))
    return h + p["b2"][None, :, None]


if __name__ == "__main__":
    cfg = dict(
        hidden_size=16,
        nblocks=2,
        dilation_rate=2,
        first_dilated_layer=1,
        resnet_bottleneck_factor=0.5,
        hidden_act="gelu",
        output_hidden_states=False,
    )
    key = jax.random.PRNGKey(0)
    kx, kp = jax.random.split(key)

    N, C, L = 2, cfg["hidden_size"], 48                 # (batch, channels, seq_len), NCL
    x = jax.random.normal(kx, (N, C, L), jnp.float32)
    params = init_params(kp, cfg)

    outputs = resnet_forward(x, params, cfg)
    hs = jax.block_until_ready(outputs[0])              # (2, 16, 24) after two blocks

    ref = x
    for i, p in enumerate(params):
        ref = _ref_block(ref, p, block_dilation(cfg, i))
    ref = jax.block_until_ready(ref)

    assert hs.shape == ref.shape, (hs.shape, ref.shape)
    max_err = float(jnp.max(jnp.abs(hs - ref)))
    # bf16 matmul operands (f32 accumulation) + tanh-form GELU vs the exact erf-GELU
    # reference => looser tolerance than a pure-f32 kernel; observed error ~1e-2.
    assert max_err < 5e-2, f"mismatch vs reference: {max_err}"
    print("KERNEL_OK")
</pallas_src>

<mosaic_0001>
module attributes {stable_mosaic.version = 11 : i64} {
  func.func @resnet_kernel(%arg0: i32, %arg1: memref<16x128xf32, #tpu.memory_space<vmem>>, %arg2: memref<2x16x1xf32, #tpu.memory_space<vmem>>, %arg3: memref<2x16x1xf32, #tpu.memory_space<vmem>>, %arg4: memref<2x8x144xbf16, #tpu.memory_space<vmem>>, %arg5: memref<2x8x1xf32, #tpu.memory_space<vmem>>, %arg6: memref<2x16x8xbf16, #tpu.memory_space<vmem>>, %arg7: memref<2x16x1xf32, #tpu.memory_space<vmem>>, %arg8: memref<16x128xf32, #tpu.memory_space<vmem>>, %arg9: memref<144x128xbf16, #tpu.memory_space<vmem>>) attributes {dimension_semantics = [#tpu.dimension_semantics<parallel>], iteration_bounds = array<i64: 2>, scalar_prefetch = 0 : i64, scratch_operands = 1 : i64, tpu.core_type = #tpu.core_type<tc>, window_params = [{transform_indices = @transform_0, window_bounds = array<i64: 16, 128>}, {pipeline_mode = #tpu.pipeline_mode<synchronous>, transform_indices = @transform_1, window_bounds = array<i64: 2, 16, 1>}, {pipeline_mode = #tpu.pipeline_mode<synchronous>, transform_indices = @transform_2, window_bounds = array<i64: 2, 16, 1>}, {pipeline_mode = #tpu.pipeline_mode<synchronous>, transform_indices = @transform_3, window_bounds = array<i64: 2, 8, 144>}, {pipeline_mode = #tpu.pipeline_mode<synchronous>, transform_indices = @transform_4, window_bounds = array<i64: 2, 8, 1>}, {pipeline_mode = #tpu.pipeline_mode<synchronous>, transform_indices = @transform_5, window_bounds = array<i64: 2, 16, 8>}, {pipeline_mode = #tpu.pipeline_mode<synchronous>, transform_indices = @transform_6, window_bounds = array<i64: 2, 16, 1>}, {transform_indices = @transform_7, window_bounds = array<i64: 16, 128>}]} {
    %c0 = arith.constant 0 : index
    %c0_0 = arith.constant 0 : index
    %0 = vector.load %arg1[%c0, %c0_0] : memref<16x128xf32, #tpu.memory_space<vmem>>, vector<16x128xf32>
    %c0_1 = arith.constant 0 : index
    %c0_2 = arith.constant 0 : index
    %c0_3 = arith.constant 0 : index
    %1 = vector.load %arg2[%c0_1, %c0_2, %c0_3] : memref<2x16x1xf32, #tpu.memory_space<vmem>>, vector<1x16x1xf32>
    %2 = vector.shape_cast %1 : vector<1x16x1xf32> to vector<16x1xf32>
    %3 = vector.broadcast %2 : vector<16x1xf32> to vector<16x128xf32>
    %4 = arith.mulf %0, %3 : vector<16x128xf32>
    %c0_4 = arith.constant 0 : index
    %c0_5 = arith.constant 0 : index
    %c0_6 = arith.constant 0 : index
    %5 = vector.load %arg3[%c0_4, %c0_5, %c0_6] : memref<2x16x1xf32, #tpu.memory_space<vmem>>, vector<1x16x1xf32>
    %6 = vector.shape_cast %5 : vector<1x16x1xf32> to vector<16x1xf32>
    %7 = vector.broadcast %6 : vector<16x1xf32> to vector<16x128xf32>
    %8 = arith.addf %4, %7 : vector<16x128xf32>
    %cst = arith.constant 0.797884583 : f32
    %9 = vector.broadcast %cst : f32 to vector<16x128xf32>
    %10 = arith.mulf %9, %8 : vector<16x128xf32>
    %11 = arith.mulf %8, %8 : vector<16x128xf32>
    %cst_7 = arith.constant 4.471500e-02 : f32
    %12 = vector.broadcast %cst_7 : f32 to vector<16x128xf32>
    %13 = arith.mulf %12, %11 : vector<16x128xf32>
    %cst_8 = arith.constant 1.000000e+00 : f32
    %14 = vector.broadcast %cst_8 : f32 to vector<16x128xf32>
    %15 = arith.addf %14, %13 : vector<16x128xf32>
    %16 = arith.mulf %10, %15 : vector<16x128xf32>
    %cst_9 = arith.constant 5.000000e-01 : f32
    %17 = vector.broadcast %cst_9 : f32 to vector<16x128xf32>
    %18 = arith.mulf %17, %8 : vector<16x128xf32>
    %19 = math.tanh %16 : vector<16x128xf32>
    %cst_10 = arith.constant 1.000000e+00 : f32
    %20 = vector.broadcast %cst_10 : f32 to vector<16x128xf32>
    %21 = arith.addf %20, %19 : vector<16x128xf32>
    %22 = arith.mulf %18, %21 : vector<16x128xf32>
    %23 = arith.truncf %22 : vector<16x128xf32> to vector<16x128xbf16>
    %c0_11 = arith.constant 0 : index
    %c0_12 = arith.constant 0 : index
    %24 = vector.load %arg9[%c0_11, %c0_12] : memref<144x128xbf16, #tpu.memory_space<vmem>>, vector<16x128xbf16>
    tpu.vector_store %arg9[%c0_11, %c0_12], %23 {strides = array<i32>} : memref<144x128xbf16, #tpu.memory_space<vmem>>, vector<16x128xbf16>,
    %25 = vector.extract_strided_slice %23 {offsets = [0, 1], sizes = [16, 127], strides = [1, 1]} : vector<16x128xbf16> to vector<16x127xbf16>
    %c16 = arith.constant 16 : index
    %c0_13 = arith.constant 0 : index
    %26 = vector.load %arg9[%c16, %c0_13] : memref<144x128xbf16, #tpu.memory_space<vmem>>, vector<16x127xbf16>
    tpu.vector_store %arg9[%c16, %c0_13], %25 {strides = array<i32>} : memref<144x128xbf16, #tpu.memory_space<vmem>>, vector<16x127xbf16>,
    %27 = vector.extract_strided_slice %23 {offsets = [0, 2], sizes = [16, 126], strides = [1, 1]} : vector<16x128xbf16> to vector<16x126xbf16>
    %c32 = arith.constant 32 : index
    %c0_14 = arith.constant 0 : index
    %28 = vector.load %arg9[%c32, %c0_14] : memref<144x128xbf16, #tpu.memory_space<vmem>>, vector<16x126xbf16>
    tpu.vector_store %arg9[%c32, %c0_14], %27 {strides = array<i32>} : memref<144x128xbf16, #tpu.memory_space<vmem>>, vector<16x126xbf16>,
    %29 = vector.extract_strided_slice %23 {offsets = [0, 3], sizes = [16, 125], strides = [1, 1]} : vector<16x128xbf16> to vector<16x125xbf16>
    %c48 = arith.constant 48 : index
    %c0_15 = arith.constant 0 : index
    %30 = vector.load %arg9[%c48, %c0_15] : memref<144x128xbf16, #tpu.memory_space<vmem>>, vector<16x125xbf16>
    tpu.vector_store %arg9[%c48, %c0_15], %29 {strides = array<i32>} : memref<144x128xbf16, #tpu.memory_space<vmem>>, vector<16x125xbf16>,
    %31 = vector.extract_strided_slice %23 {offsets = [0, 4], sizes = [16, 124], strides = [1, 1]} : vector<16x128xbf16> to vector<16x124xbf16>
    %c64 = arith.constant 64 : index
    %c0_16 = arith.constant 0 : index
    %32 = vector.load %arg9[%c64, %c0_16] : memref<144x128xbf16, #tpu.memory_space<vmem>>, vector<16x124xbf16>
    tpu.vector_store %arg9[%c64, %c0_16], %31 {strides = array<i32>} : memref<144x128xbf16, #tpu.memory_space<vmem>>, vector<16x124xbf16>,
    %33 = vector.extract_strided_slice %23 {offsets = [0, 5], sizes = [16, 123], strides = [1, 1]} : vector<16x128xbf16> to vector<16x123xbf16>
    %c80 = arith.constant 80 : index
    %c0_17 = arith.constant 0 : index
    %34 = vector.load %arg9[%c80, %c0_17] : memref<144x128xbf16, #tpu.memory_space<vmem>>, vector<16x123xbf16>
    tpu.vector_store %arg9[%c80, %c0_17], %33 {strides = array<i32>} : memref<144x128xbf16, #tpu.memory_space<vmem>>, vector<16x123xbf16>,
    %35 = vector.extract_strided_slice %23 {offsets = [0, 6], sizes = [16, 122], strides = [1, 1]} : vector<16x128xbf16> to vector<16x122xbf16>
    %c96 = arith.constant 96 : index
    %c0_18 = arith.constant 0 : index
    %36 = vector.load %arg9[%c96, %c0_18] : memref<144x128xbf16, #tpu.memory_space<vmem>>, vector<16x122xbf16>
    tpu.vector_store %arg9[%c96, %c0_18], %35 {strides = array<i32>} : memref<144x128xbf16, #tpu.memory_space<vmem>>, vector<16x122xbf16>,
    %37 = vector.extract_strided_slice %23 {offsets = [0, 7], sizes = [16, 121], strides = [1, 1]} : vector<16x128xbf16> to vector<16x121xbf16>
    %c112 = arith.constant 112 : index
    %c0_19 = arith.constant 0 : index
    %38 = vector.load %arg9[%c112, %c0_19] : memref<144x128xbf16, #tpu.memory_space<vmem>>, vector<16x121xbf16>
    tpu.vector_store %arg9[%c112, %c0_19], %37 {strides = array<i32>} : memref<144x128xbf16, #tpu.memory_space<vmem>>, vector<16x121xbf16>,
    %39 = vector.extract_strided_slice %23 {offsets = [0, 8], sizes = [16, 120], strides = [1, 1]} : vector<16x128xbf16> to vector<16x120xbf16>
    %c128 = arith.constant 128 : index
    %c0_20 = arith.constant 0 : index
    %40 = vector.load %arg9[%c128, %c0_20] : memref<144x128xbf16, #tpu.memory_space<vmem>>, vector<16x120xbf16>
    tpu.vector_store %arg9[%c128, %c0_20], %39 {strides = array<i32>} : memref<144x128xbf16, #tpu.memory_space<vmem>>, vector<16x120xbf16>,
    %c0_21 = arith.constant 0 : index
    %c0_22 = arith.constant 0 : index
    %c0_23 = arith.constant 0 : index
    %41 = vector.load %arg4[%c0_21, %c0_22, %c0_23] : memref<2x8x144xbf16, #tpu.memory_space<vmem>>, vector<1x8x144xbf16>
    %42 = vector.shape_cast %41 : vector<1x8x144xbf16> to vector<8x144xbf16>
    %c0_24 = arith.constant 0 : index
    %c0_25 = arith.constant 0 : index
    %43 = vector.load %arg9[%c0_24, %c0_25] : memref<144x128xbf16, #tpu.memory_space<vmem>>, vector<144x128xbf16>
    %cst_26 = arith.constant dense<0.000000e+00> : vector<8x128xf32>
    %44 = tpu.matmul %42, %43, %cst_26 {dimension_numbers = #tpu.dot_dimension_numbers<[1], [0], [0], [1], [0, 0, 1, 1], [], []>} : vector<8x144xbf16>, vector<144x128xbf16>, vector<8x128xf32> -> vector<8x128xf32>
    %c0_27 = arith.constant 0 : index
    %c0_28 = arith.constant 0 : index
    %c0_29 = arith.constant 0 : index
    %45 = vector.load %arg5[%c0_27, %c0_28, %c0_29] : memref<2x8x1xf32, #tpu.memory_space<vmem>>, vector<1x8x1xf32>
    %46 = vector.shape_cast %45 : vector<1x8x1xf32> to vector<8x1xf32>
    %47 = vector.broadcast %46 : vector<8x1xf32> to vector<8x128xf32>
    %48 = arith.addf %44, %47 : vector<8x128xf32>
    %cst_30 = arith.constant 0.797884583 : f32
    %49 = vector.broadcast %cst_30 : f32 to vector<8x128xf32>
    %50 = arith.mulf %49, %48 : vector<8x128xf32>
    %51 = arith.mulf %48, %48 : vector<8x128xf32>
    %cst_31 = arith.constant 4.471500e-02 : f32
    %52 = vector.broadcast %cst_31 : f32 to vector<8x128xf32>
    %53 = arith.mulf %52, %51 : vector<8x128xf32>
    %cst_32 = arith.constant 1.000000e+00 : f32
    %54 = vector.broadcast %cst_32 : f32 to vector<8x128xf32>
    %55 = arith.addf %54, %53 : vector<8x128xf32>
    %56 = arith.mulf %50, %55 : vector<8x128xf32>
    %cst_33 = arith.constant 5.000000e-01 : f32
    %57 = vector.broadcast %cst_33 : f32 to vector<8x128xf32>
    %58 = arith.mulf %57, %48 : vector<8x128xf32>
    %59 = math.tanh %56 : vector<8x128xf32>
    %cst_34 = arith.constant 1.000000e+00 : f32
    %60 = vector.broadcast %cst_34 : f32 to vector<8x128xf32>
    %61 = arith.addf %60, %59 : vector<8x128xf32>
    %62 = arith.mulf %58, %61 : vector<8x128xf32>
    %c0_35 = arith.constant 0 : index
    %c0_36 = arith.constant 0 : index
    %c0_37 = arith.constant 0 : index
    %63 = vector.load %arg6[%c0_35, %c0_36, %c0_37] : memref<2x16x8xbf16, #tpu.memory_space<vmem>>, vector<1x16x8xbf16>
    %64 = vector.shape_cast %63 : vector<1x16x8xbf16> to vector<16x8xbf16>
    %65 = arith.truncf %62 : vector<8x128xf32> to vector<8x128xbf16>
    %cst_38 = arith.constant dense<0.000000e+00> : vector<16x128xf32>
    %66 = tpu.matmul %64, %65, %cst_38 {dimension_numbers = #tpu.dot_dimension_numbers<[1], [0], [0], [1], [0, 0, 1, 1], [], []>} : vector<16x8xbf16>, vector<8x128xbf16>, vector<16x128xf32> -> vector<16x128xf32>
    %c0_39 = arith.constant 0 : index
    %c0_40 = arith.constant 0 : index
    %c0_41 = arith.constant 0 : index
    %67 = vector.load %arg7[%c0_39, %c0_40, %c0_41] : memref<2x16x1xf32, #tpu.memory_space<vmem>>, vector<1x16x1xf32>
    %68 = vector.shape_cast %67 : vector<1x16x1xf32> to vector<16x1xf32>
    %69 = vector.broadcast %68 : vector<16x1xf32> to vector<16x128xf32>
    %70 = arith.addf %66, %69 : vector<16x128xf32>
    %c1 = arith.constant 1 : index
    %c0_42 = arith.constant 0 : index
    %c0_43 = arith.constant 0 : index
    %71 = vector.load %arg2[%c1, %c0_42, %c0_43] : memref<2x16x1xf32, #tpu.memory_space<vmem>>, vector<1x16x1xf32>
    %72 = vector.shape_cast %71 : vector<1x16x1xf32> to vector<16x1xf32>
    %73 = vector.broadcast %72 : vector<16x1xf32> to vector<16x128xf32>
    %74 = arith.mulf %70, %73 : vector<16x128xf32>
    %c1_44 = arith.constant 1 : index
    %c0_45 = arith.constant 0 : index
    %c0_46 = arith.constant 0 : index
    %75 = vector.load %arg3[%c1_44, %c0_45, %c0_46] : memref<2x16x1xf32, #tpu.memory_space<vmem>>, vector<1x16x1xf32>
    %76 = vector.shape_cast %75 : vector<1x16x1xf32> to vector<16x1xf32>
    %77 = vector.broadcast %76 : vector<16x1xf32> to vector<16x128xf32>
    %78 = arith.addf %74, %77 : vector<16x128xf32>
    %cst_47 = arith.constant 0.797884583 : f32
    %79 = vector.broadcast %cst_47 : f32 to vector<16x128xf32>
    %80 = arith.mulf %79, %78 : vector<16x128xf32>
    %81 = arith.mulf %78, %78 : vector<16x128xf32>
    %cst_48 = arith.constant 4.471500e-02 : f32
    %82 = vector.broadcast %cst_48 : f32 to vector<16x128xf32>
    %83 = arith.mulf %82, %81 : vector<16x128xf32>
    %cst_49 = arith.constant 1.000000e+00 : f32
    %84 = vector.broadcast %cst_49 : f32 to vector<16x128xf32>
    %85 = arith.addf %84, %83 : vector<16x128xf32>
    %86 = arith.mulf %80, %85 : vector<16x128xf32>
    %cst_50 = arith.constant 5.000000e-01 : f32
    %87 = vector.broadcast %cst_50 : f32 to vector<16x128xf32>
    %88 = arith.mulf %87, %78 : vector<16x128xf32>
    %89 = math.tanh %86 : vector<16x128xf32>
    %cst_51 = arith.constant 1.000000e+00 : f32
    %90 = vector.broadcast %cst_51 : f32 to vector<16x128xf32>
    %91 = arith.addf %90, %89 : vector<16x128xf32>
    %92 = arith.mulf %88, %91 : vector<16x128xf32>
    %93 = arith.truncf %92 : vector<16x128xf32> to vector<16x128xbf16>
    %c0_52 = arith.constant 0 : index
    %c0_53 = arith.constant 0 : index
    %94 = vector.load %arg9[%c0_52, %c0_53] : memref<144x128xbf16, #tpu.memory_space<vmem>>, vector<16x128xbf16>
    tpu.vector_store %arg9[%c0_52, %c0_53], %93 {strides = array<i32>} : memref<144x128xbf16, #tpu.memory_space<vmem>>, vector<16x128xbf16>,
    %95 = vector.extract_strided_slice %93 {offsets = [0, 2], sizes = [16, 126], strides = [1, 1]} : vector<16x128xbf16> to vector<16x126xbf16>
    %c16_54 = arith.constant 16 : index
    %c0_55 = arith.constant 0 : index
    %96 = vector.load %arg9[%c16_54, %c0_55] : memref<144x128xbf16, #tpu.memory_space<vmem>>, vector<16x126xbf16>
    tpu.vector_store %arg9[%c16_54, %c0_55], %95 {strides = array<i32>} : memref<144x128xbf16, #tpu.memory_space<vmem>>, vector<16x126xbf16>,
    %97 = vector.extract_strided_slice %93 {offsets = [0, 4], sizes = [16, 124], strides = [1, 1]} : vector<16x128xbf16> to vector<16x124xbf16>
    %c32_56 = arith.constant 32 : index
    %c0_57 = arith.constant 0 : index
    %98 = vector.load %arg9[%c32_56, %c0_57] : memref<144x128xbf16, #tpu.memory_space<vmem>>, vector<16x124xbf16>
    tpu.vector_store %arg9[%c32_56, %c0_57], %97 {strides = array<i32>} : memref<144x128xbf16, #tpu.memory_space<vmem>>, vector<16x124xbf16>,
    %99 = vector.extract_strided_slice %93 {offsets = [0, 6], sizes = [16, 122], strides = [1, 1]} : vector<16x128xbf16> to vector<16x122xbf16>
    %c48_58 = arith.constant 48 : index
    %c0_59 = arith.constant 0 : index
    %100 = vector.load %arg9[%c48_58, %c0_59] : memref<144x128xbf16, #tpu.memory_space<vmem>>, vector<16x122xbf16>
    tpu.vector_store %arg9[%c48_58, %c0_59], %99 {strides = array<i32>} : memref<144x128xbf16, #tpu.memory_space<vmem>>, vector<16x122xbf16>,
    %101 = vector.extract_strided_slice %93 {offsets = [0, 8], sizes = [16, 120], strides = [1, 1]} : vector<16x128xbf16> to vector<16x120xbf16>
    %c64_60 = arith.constant 64 : index
    %c0_61 = arith.constant 0 : index
    %102 = vector.load %arg9[%c64_60, %c0_61] : memref<144x128xbf16, #tpu.memory_space<vmem>>, vector<16x120xbf16>
    tpu.vector_store %arg9[%c64_60, %c0_61], %101 {strides = array<i32>} : memref<144x128xbf16, #tpu.memory_space<vmem>>, vector<16x120xbf16>,
    %103 = vector.extract_strided_slice %93 {offsets = [0, 10], sizes = [16, 118], strides = [1, 1]} : vector<16x128xbf16> to vector<16x118xbf16>
    %c80_62 = arith.constant 80 : index
    %c0_63 = arith.constant 0 : index
    %104 = vector.load %arg9[%c80_62, %c0_63] : memref<144x128xbf16, #tpu.memory_space<vmem>>, vector<16x118xbf16>
    tpu.vector_store %arg9[%c80_62, %c0_63], %103 {strides = array<i32>} : memref<144x128xbf16, #tpu.memory_space<vmem>>, vector<16x118xbf16>,
    %105 = vector.extract_strided_slice %93 {offsets = [0, 12], sizes = [16, 116], strides = [1, 1]} : vector<16x128xbf16> to vector<16x116xbf16>
    %c96_64 = arith.constant 96 : index
    %c0_65 = arith.constant 0 : index
    %106 = vector.load %arg9[%c96_64, %c0_65] : memref<144x128xbf16, #tpu.memory_space<vmem>>, vector<16x116xbf16>
    tpu.vector_store %arg9[%c96_64, %c0_65], %105 {strides = array<i32>} : memref<144x128xbf16, #tpu.memory_space<vmem>>, vector<16x116xbf16>,
    %107 = vector.extract_strided_slice %93 {offsets = [0, 14], sizes = [16, 114], strides = [1, 1]} : vector<16x128xbf16> to vector<16x114xbf16>
    %c112_66 = arith.constant 112 : index
    %c0_67 = arith.constant 0 : index
    %108 = vector.load %arg9[%c112_66, %c0_67] : memref<144x128xbf16, #tpu.memory_space<vmem>>, vector<16x114xbf16>
    tpu.vector_store %arg9[%c112_66, %c0_67], %107 {strides = array<i32>} : memref<144x128xbf16, #tpu.memory_space<vmem>>, vector<16x114xbf16>,
    %109 = vector.extract_strided_slice %93 {offsets = [0, 16], sizes = [16, 112], strides = [1, 1]} : vector<16x128xbf16> to vector<16x112xbf16>
    %c128_68 = arith.constant 128 : index
    %c0_69 = arith.constant 0 : index
    %110 = vector.load %arg9[%c128_68, %c0_69] : memref<144x128xbf16, #tpu.memory_space<vmem>>, vector<16x112xbf16>
    tpu.vector_store %arg9[%c128_68, %c0_69], %109 {strides = array<i32>} : memref<144x128xbf16, #tpu.memory_space<vmem>>, vector<16x112xbf16>,
    %c1_70 = arith.constant 1 : index
    %c0_71 = arith.constant 0 : index
    %c0_72 = arith.constant 0 : index
    %111 = vector.load %arg4[%c1_70, %c0_71, %c0_72] : memref<2x8x144xbf16, #tpu.memory_space<vmem>>, vector<1x8x144xbf16>
    %112 = vector.shape_cast %111 : vector<1x8x144xbf16> to vector<8x144xbf16>
    %c0_73 = arith.constant 0 : index
    %c0_74 = arith.constant 0 : index
    %113 = vector.load %arg9[%c0_73, %c0_74] : memref<144x128xbf16, #tpu.memory_space<vmem>>, vector<144x128xbf16>
    %cst_75 = arith.constant dense<0.000000e+00> : vector<8x128xf32>
    %114 = tpu.matmul %112, %113, %cst_75 {dimension_numbers = #tpu.dot_dimension_numbers<[1], [0], [0], [1], [0, 0, 1, 1], [], []>} : vector<8x144xbf16>, vector<144x128xbf16>, vector<8x128xf32> -> vector<8x128xf32>
    %c1_76 = arith.constant 1 : index
    %c0_77 = arith.constant 0 : index
    %c0_78 = arith.constant 0 : index
    %115 = vector.load %arg5[%c1_76, %c0_77, %c0_78] : memref<2x8x1xf32, #tpu.memory_space<vmem>>, vector<1x8x1xf32>
    %116 = vector.shape_cast %115 : vector<1x8x1xf32> to vector<8x1xf32>
    %117 = vector.broadcast %116 : vector<8x1xf32> to vector<8x128xf32>
    %118 = arith.addf %114, %117 : vector<8x128xf32>
    %cst_79 = arith.constant 0.797884583 : f32
    %119 = vector.broadcast %cst_79 : f32 to vector<8x128xf32>
    %120 = arith.mulf %119, %118 : vector<8x128xf32>
    %121 = arith.mulf %118, %118 : vector<8x128xf32>
    %cst_80 = arith.constant 4.471500e-02 : f32
    %122 = vector.broadcast %cst_80 : f32 to vector<8x128xf32>
    %123 = arith.mulf %122, %121 : vector<8x128xf32>
    %cst_81 = arith.constant 1.000000e+00 : f32
    %124 = vector.broadcast %cst_81 : f32 to vector<8x128xf32>
    %125 = arith.addf %124, %123 : vector<8x128xf32>
    %126 = arith.mulf %120, %125 : vector<8x128xf32>
    %cst_82 = arith.constant 5.000000e-01 : f32
    %127 = vector.broadcast %cst_82 : f32 to vector<8x128xf32>
    %128 = arith.mulf %127, %118 : vector<8x128xf32>
    %129 = math.tanh %126 : vector<8x128xf32>
    %cst_83 = arith.constant 1.000000e+00 : f32
    %130 = vector.broadcast %cst_83 : f32 to vector<8x128xf32>
    %131 = arith.addf %130, %129 : vector<8x128xf32>
    %132 = arith.mulf %128, %131 : vector<8x128xf32>
    %c1_84 = arith.constant 1 : index
    %c0_85 = arith.constant 0 : index
    %c0_86 = arith.constant 0 : index
    %133 = vector.load %arg6[%c1_84, %c0_85, %c0_86] : memref<2x16x8xbf16, #tpu.memory_space<vmem>>, vector<1x16x8xbf16>
    %134 = vector.shape_cast %133 : vector<1x16x8xbf16> to vector<16x8xbf16>
    %135 = arith.truncf %132 : vector<8x128xf32> to vector<8x128xbf16>
    %cst_87 = arith.constant dense<0.000000e+00> : vector<16x128xf32>
    %136 = tpu.matmul %134, %135, %cst_87 {dimension_numbers = #tpu.dot_dimension_numbers<[1], [0], [0], [1], [0, 0, 1, 1], [], []>} : vector<16x8xbf16>, vector<8x128xbf16>, vector<16x128xf32> -> vector<16x128xf32>
    %c1_88 = arith.constant 1 : index
    %c0_89 = arith.constant 0 : index
    %c0_90 = arith.constant 0 : index
    %137 = vector.load %arg7[%c1_88, %c0_89, %c0_90] : memref<2x16x1xf32, #tpu.memory_space<vmem>>, vector<1x16x1xf32>
    %138 = vector.shape_cast %137 : vector<1x16x1xf32> to vector<16x1xf32>
    %139 = vector.broadcast %138 : vector<16x1xf32> to vector<16x128xf32>
    %140 = arith.addf %136, %139 : vector<16x128xf32>
    %c0_91 = arith.constant 0 : index
    %c0_92 = arith.constant 0 : index
    %141 = vector.load %arg8[%c0_91, %c0_92] : memref<16x128xf32, #tpu.memory_space<vmem>>, vector<16x128xf32>
    tpu.vector_store %arg8[%c0_91, %c0_92], %140 {strides = array<i32>} : memref<16x128xf32, #tpu.memory_space<vmem>>, vector<16x128xf32>,
    return
  }
  func.func @transform_0(%arg0: i32) -> (i32, i32) {
    %c0_i32 = arith.constant 0 : i32
    %c0_i32_0 = arith.constant 0 : i32
    return %c0_i32, %arg0 : i32, i32
  }
  func.func @transform_1(%arg0: i32) -> (i32, i32, i32) {
    %c0_i32 = arith.constant 0 : i32
    %c0_i32_0 = arith.constant 0 : i32
    %c0_i32_1 = arith.constant 0 : i32
    %c0_i32_2 = arith.constant 0 : i32
    return %c0_i32, %c0_i32_0, %c0_i32_1 : i32, i32, i32
  }
  func.func @transform_2(%arg0: i32) -> (i32, i32, i32) {
    %c0_i32 = arith.constant 0 : i32
    %c0_i32_0 = arith.constant 0 : i32
    %c0_i32_1 = arith.constant 0 : i32
    %c0_i32_2 = arith.constant 0 : i32
    return %c0_i32, %c0_i32_0, %c0_i32_1 : i32, i32, i32
  }
  func.func @transform_3(%arg0: i32) -> (i32, i32, i32) {
    %c0_i32 = arith.constant 0 : i32
    %c0_i32_0 = arith.constant 0 : i32
    %c0_i32_1 = arith.constant 0 : i32
    %c0_i32_2 = arith.constant 0 : i32
    return %c0_i32, %c0_i32_0, %c0_i32_1 : i32, i32, i32
  }
  func.func @transform_4(%arg0: i32) -> (i32, i32, i32) {
    %c0_i32 = arith.constant 0 : i32
    %c0_i32_0 = arith.constant 0 : i32
    %c0_i32_1 = arith.constant 0 : i32
    %c0_i32_2 = arith.constant 0 : i32
    return %c0_i32, %c0_i32_0, %c0_i32_1 : i32, i32, i32
  }
  func.func @transform_5(%arg0: i32) -> (i32, i32, i32) {
    %c0_i32 = arith.constant 0 : i32
    %c0_i32_0 = arith.constant 0 : i32
    %c0_i32_1 = arith.constant 0 : i32
    %c0_i32_2 = arith.constant 0 : i32
    return %c0_i32, %c0_i32_0, %c0_i32_1 : i32, i32, i32
  }
  func.func @transform_6(%arg0: i32) -> (i32, i32, i32) {
    %c0_i32 = arith.constant 0 : i32
    %c0_i32_0 = arith.constant 0 : i32
    %c0_i32_1 = arith.constant 0 : i32
    %c0_i32_2 = arith.constant 0 : i32
    return %c0_i32, %c0_i32_0, %c0_i32_1 : i32, i32, i32
  }
  func.func @transform_7(%arg0: i32) -> (i32, i32) {
    %c0_i32 = arith.constant 0 : i32
    %c0_i32_0 = arith.constant 0 : i32
    return %c0_i32, %arg0 : i32, i32
  }
}

</mosaic_0001>

<bundles_post_ra>
// kernel: tpu_custom_call.1
= control target key start
LH: loop header
LB: loop body
LE: loop exit
PB: predicated region body
PF: predicated region fallthrough
CT: control target
= control target key end

     0   :  { %12 = vsyncpa [#allocation5], 0  ;;  %s1326_s0 = inlined_call_operand.vmem [shape: f32[16,256], index: 0, kind: input, shape index: {}]   ;;  %s1327_s1 = inlined_call_operand.vmem [shape: f32[2,16,1], index: 1, kind: input, shape index: {}]   ;;  %s1328_s2 = inlined_call_operand.vmem [shape: f32[2,16,1], index: 2, kind: input, shape index: {}]   ;;  %s1329_s3 = inlined_call_operand.vmem [shape: bf16[2,8,144], index: 3, kind: input, shape index: {}]   ;;  %s1330_s4 = inlined_call_operand.vmem [shape: f32[2,8,1], index: 4, kind: input, shape index: {}]   ;;  %s1331_s5 = inlined_call_operand.vmem [shape: bf16[2,16,8], index: 5, kind: input, shape index: {}]   ;;  %s1332_s6 = inlined_call_operand.vmem [shape: f32[2,16,1], index: 6, kind: input, shape index: {}]   ;;  %s1333_s7 = inlined_call_operand.hbm [shape: f32[16,256], index: 7, kind: output, shape index: {}]  }
   0x1   :  { %14 = vsyncpa [#allocation5 + $0x1], 0  ;;  %s1114_s24 = smov 0   ;;  %s1116_s25 = smov 0  }
   0x2   :  { %s1118_s26 = smov 0   ;;  %s1120_s27 = smov 0  }
   0x3 LB: > { %s1335_s28 = sadd.s32 4294967295, %s1053_s27   ;;  %s866_s29 = sadd.s32 4294967294, %s1053_s27   ;;  %s1053_s27 = sphi %s1120_s27, %s1343_s27   ;;  %s1049_s26 = sphi %s1118_s26, %s1342_s26   ;;  %s1045_s25 = sphi %s1116_s25, %s1341_s25   ;;  %s1041_s24 = sphi %s1114_s24, %s1340_s24  }
   0x4   : > { %s1137_s30 = sadd.s32 1, %s1053_s27   ;;  %s27_s8 = sadd.s32 1, %s1049_s26 }
   0x5   : > { %s24_s9 = ssub.s32 %s1053_s27, %s1137_s30  ;;  %p34_p0 = scmp.ne.s32.totalorder %s1049_s26, %s1045_s25 }
   0x6   : > { %p25_p1 = scmp.eq.s32.totalorder %s24_s9, 0  ;;  %p35_p2 = scmp.eq.s32.totalorder %s1053_s27, 0 }
   0x7   : > { %p190_p3 = scmp.eq.s32.totalorder %s1335_s28, 1  ;;  %p195_p4 = scmp.ne.s32.totalorder %s1045_s25, %s1041_s24 }
   0x8   : > { %s1150_s10 = scalar_select %p25_p1, %s1049_s26, %s27_s8  }
   0x9   : > { %p36_p5 = por %p35_p2, %p34_p0  ;;  %p1152_p6 = por %p190_p3, %p34_p0 }
   0xa   : > { %p196_p7 = scmp.eq.s32.totalorder %s866_s29, 1  ;;  %p868_p9 = scmp.ge.s32.totalorder %s1053_s27, 2 }
   0xc   : > { %p1156_p8 = por %p196_p7, %p195_p4  ;;  %230 = sbr.rel (%p868_p9) target bundleno = 26 (0x1a), region = 40 }
  0x13   : > { %233 = sbr.rel (!%p36_p5) target bundleno = 26 (0x1a), region = 44  ;;  %s235_s13 = sand.u32 (%p36_p5), 1, %s1049_s26  }
  0x14   : > { %s870_s14 = sshll.u32 (%p36_p5), %s1053_s27, 3  ;;  %s869_s15 = sshll.u32 (%p36_p5), %s235_s13, 4 }
  0x15   : > { %s239_s18 = scalar_lea.vmem (%p36_p5), %s1326_s0, %s870_s14  ;;  %s237_s19 = scalar_lea.vmem (%p36_p5), [#allocation3], %s869_s15 }
  0x16   : > { %v269_v0 = vld [vmem:[%s239_s18] sm:$0xff] (%p36_p5)  ;;  %v271_v1 = vld [vmem:[%s239_s18 + $0x10] sm:$0xff] (%p36_p5) }
  0x17   : > { %270 = vst [vmem:[%s237_s19] sm:$0xff] (%p36_p5), %v269_v0  ;;  %272 = vst [vmem:[%s237_s19 + $0x8] sm:$0xff] (%p36_p5), %v271_v1 }
  0x1a PF: > { %p871_p10 = scmp.ge.s32.totalorder %s1053_s27, 1  ;;  %p277_p11 = scmp.lt.s32.totalorder %s1053_s27, 3 }
  0x1c   : > { %p278_p12 = pnand %p871_p10, %p277_p11 }
  0x1d   : > { %v332_v2 = vld [vmem:[%s1328_s2] sm:$0xff] (!%p278_p12)  ;;  %v1055_v4 = vmov (!%p278_p12), 0   ;;  %v333_v5 = vld [vmem:[%s1328_s2 + $0x8] sm:$0xff] (!%p278_p12)  ;;  %s1334_s14 = sand.u32 (!%p278_p12), 1, %s1045_s25   ;;  %s1056_s17 = smov (!%p278_p12), 126   ;;  %v879_v38 = vld [vmem:[%s1327_s1 + $0x10] sm:$0xff] (!%p278_p12) }
  0x1e   : > { %281 = sbr.rel (%p278_p12) target bundleno = 1465 (0x5b9), region = 82  ;;  %v318_v3 = vld [vmem:[%s1327_s1] sm:$0xff] (!%p278_p12)  ;;  %972 = vset.pattern.permute.xlu1 (!%p278_p12), %v1055_v4  ;;  %971 = vset.pattern.permute.xlu0 (!%p278_p12), %v1055_v4  ;;  %v319_v6 = vld [vmem:[%s1327_s1 + $0x8] sm:$0xff] (!%p278_p12)  ;;  %s1188_s15 = sshll.u32 (!%p278_p12), %s1334_s14, 4  ;;  %v881_v40 = vld [vmem:[%s1328_s2 + $0x10] sm:$0xff] (!%p278_p12)  ;;  %vm429_vm0 = vcmask (!%p278_p12), 130048  }
  0x1f   : > { %336 = vperm.xlu1 (!%p278_p12), %972, %v332_v2   ;;  %322 = vperm.xlu0 (!%p278_p12), %971, %v318_v3   ;;  %s286_s16 = scalar_lea.vmem (!%p278_p12), [#allocation3], %s1188_s15  ;;  %s1057_s18 = smov (!%p278_p12), 127   ;;  %v485_v36 = vld [vmem:[%s1332_s6] sm:$0xff] (!%p278_p12)  ;;  %v486_v39 = vld [vmem:[%s1332_s6 + $0x8] sm:$0xff] (!%p278_p12)  ;;  %v880_v41 = vld [vmem:[%s1327_s1 + $0x18] sm:$0xff] (!%p278_p12)  ;;  %vm375_vm1 = vcmask (!%p278_p12), 1031168  }
  0x20   : > { %433 = vmatprep.subr.bf16.mxu0 (!%p278_p12), %v1055_v4  ;;  %v316_v7 = vld [vmem:[%s286_s16] sm:$0xff] (!%p278_p12)  ;;  %v317_v11 = vld [vmem:[%s286_s16 + $0x8] sm:$0xff] (!%p278_p12)  ;;  %s1058_s19 = smov (!%p278_p12), 124   ;;  %s1059_s20 = smov (!%p278_p12), 125   ;;  %vm370_vm2 = vcmask (!%p278_p12), 1039360   ;;  %vm385_vm3 = vcmask (!%p278_p12), 1014784  }
  0x21   : > { %s1060_s21 = smov (!%p278_p12), 122   ;;  %s1061_s22 = smov (!%p278_p12), 123   ;;  %v417_v37 = vld [vmem:[%s1330_s4] sm:$0xff] (!%p278_p12)  ;;  %v882_v44 = vld [vmem:[%s1328_s2 + $0x18] sm:$0xff] (!%p278_p12)  ;;  %vm380_vm4 = vcmask (!%p278_p12), 1022976   ;;  %vm395_vm5 = vcmask (!%p278_p12), 998400  }
  0x22   : > { %s1062_s23 = smov (!%p278_p12), 120   ;;  %s1063_s29 = smov (!%p278_p12), 121   ;;  %v407_v42 = vld [vmem:[%s1329_s3] sm:$0xff] (!%p278_p12)  ;;  %vm390_vm6 = vcmask (!%p278_p12), 1006592   ;;  %vm405_vm7 = vcmask (!%p278_p12), 982016   ;;  %vm400_vm8 = vcmask (!%p278_p12), 990208  }
  0x23   : > { %341 = vperm.xlu1 (!%p278_p12), %972, %v333_v5   ;;  %327 = vperm.xlu0 (!%p278_p12), %971, %v319_v6   ;;  %v875_v43 = vcombine.high (!%p278_p12), %v407_v42, %v407_v42  ;;  %v874_v61 = vcombine.low (!%p278_p12), %v407_v42, %v407_v42  ;;  %v1064_v62 = vmov (!%p278_p12), 0.0   ;;  %vm1065_vm9 = vmmov (!%p278_p12), 0   ;;  %s1068_s8 = smov (!%p278_p12), 112   ;;  %s1069_s9 = smov (!%p278_p12), 114  }
  0x24   : > { %902 = vmatprep.subr.bf16.mxu1 (!%p278_p12), %v1064_v62  ;;  %904 = vmatprep.mubr.msk.bf16.mxu1 (!%p278_p12), %vm1065_vm9, %v1064_v62  ;;  %vm506_vm10 = vcmask (!%p278_p12), 1043456   ;;  %vm502_vm11 = vcmask (!%p278_p12), 64512   ;;  %vm626_vm12 = vcmask (!%p278_p12), 949248   ;;  %vm621_vm13 = vcmask (!%p278_p12), 965632  }
  0x25   : > { %876 = vmatprep.mubr.msk.bf16.mxu0 %vm429_vm0, %v875_v43  ;;  %vm636_vm14 = vcmask 916480   ;;  %vm631_vm15 = vcmask 932864  }
  0x9e   : > { %v337_v8 = vpop.permute.xlu1 %336  ;;  %v323_v9 = vpop.permute.xlu0 %322 }
  0x9f   : > { %v330_v10 = vmul.f32 %v323_v9, %v316_v7 }
  0xa1   : > { %v344_v12 = vadd.f32 %v337_v8, %v330_v10 }
  0xa2   : > { %v328_v13 = vpop.permute.xlu0 %327  ;;  %v342_v16 = vpop.permute.xlu1 %341 }
  0xa3   : > { %v348_v14 = vmul.f32 %v344_v12, %v344_v12  ;;  %v331_v15 = vmul.f32 %v328_v13, %v317_v11  ;;  %v346_v19 = vmul.f32 0.7978846, %v344_v12  ;;  %v356_v30 = vmul.f32 0.5, %v344_v12 }
  0xa5   : > { %v350_v17 = vmul.f32 0.044715, %v348_v14  ;;  %v345_v18 = vadd.f32 %v342_v16, %v331_v15 }
  0xa7   : > { %v352_v20 = vadd.f32 1.0, %v350_v17  ;;  %v349_v21 = vmul.f32 %v345_v18, %v345_v18  ;;  %v347_v24 = vmul.f32 0.7978846, %v345_v18  ;;  %v357_v31 = vmul.f32 0.5, %v345_v18  ;;  %v975_v17 = vld [vmem:[%s1331_s5] sm:$0xff]  }
  0xa9   : > { %v354_v22 = vmul.f32 %v352_v20, %v346_v19  ;;  %v351_v23 = vmul.f32 0.044715, %v349_v21 }
  0xab   : > { %979 = vtanh.f32 %v354_v22  ;;  %v353_v25 = vadd.f32 1.0, %v351_v23 }
  0xad   : > { %v355_v26 = vmul.f32 %v353_v25, %v347_v24 }
  0xaf   : > { %981 = vtanh.f32 %v355_v26 }
  0xb5   : > { %v980_v27 = vpop.eup %979 }
  0xb6   : > { %v360_v28 = vadd.f32 1.0, %v980_v27 }
  0xb8   : > { %v362_v33 = vmul.f32 %v360_v28, %v356_v30 }
  0xb9   : > { %v982_v29 = vpop.eup %981 }
  0xba   : > { %v361_v32 = vadd.f32 1.0, %v982_v29 }
  0xbc   : > { %v363_v34 = vmul.f32 %v361_v32, %v357_v31 }
  0xbe   : > { %v364_v35 = vpack.c.bf16 %v363_v34, %v362_v33 }
  0xc0   : > { %372 = vrot.lane.b32.xlu1 %v364_v35, %s1056_s17  ;;  %367 = vrot.lane.b32.xlu0 %v364_v35, %s1057_s18 }
  0xc1   : > { %434 = vmatpush1.bf16.msra.mxu0 %v364_v35 }
  0xc2   : > { %435 = vmatprep.subr.bf16.mxu0 %v1055_v4 }
  0xc4   : > { %382 = vrot.lane.b32.xlu1 %v364_v35, %s1058_s19  ;;  %377 = vrot.lane.b32.xlu0 %v364_v35, %s1059_s20 }
  0xc8   : > { %392 = vrot.lane.b32.xlu1 %v364_v35, %s1060_s21  ;;  %387 = vrot.lane.b32.xlu0 %v364_v35, %s1061_s22  ;;  %s1066_s22 = smov 116  }
  0xcc   : > { %402 = vrot.lane.b32.xlu1 %v364_v35, %s1062_s23  ;;  %397 = vrot.lane.b32.xlu0 %v364_v35, %s1063_s29  ;;  %s1067_s29 = smov 118  }
  0xd0   : > { %489 = vperm.xlu1 %972, %v485_v36   ;;  %420 = vperm.xlu0 %971, %v417_v37  }
  0xd4   : > { %556 = vperm.xlu1 %972, %v879_v38   ;;  %494 = vperm.xlu0 %971, %v486_v39  }
  0xd8   : > { %571 = vperm.xlu1 %972, %v881_v40   ;;  %561 = vperm.xlu0 %971, %v880_v41  }
  0xdc   : > { %576 = vperm.xlu0 %971, %v882_v44  }
 0x132   : > { %v373_v45 = vpop.permute.xlu1 %372  ;;  %v368_v46 = vpop.permute.xlu0 %367 }
 0x133   : > { %376 = vst.msk [vmem:[#allocation2 + $0x10] sm:$0xff] %vm375_vm1, %v373_v45 }
 0x134   : > { %371 = vst.msk [vmem:[#allocation2 + $0x8] sm:$0xff] %vm370_vm2, %v368_v46 }
 0x136   : > { %v383_v47 = vpop.permute.xlu1 %382  ;;  %v378_v48 = vpop.permute.xlu0 %377 }
 0x137   : > { %386 = vst.msk [vmem:[#allocation2 + $0x20] sm:$0xff] %vm385_vm3, %v383_v47 }
 0x138   : > { %381 = vst.msk [vmem:[#allocation2 + $0x18] sm:$0xff] %vm380_vm4, %v378_v48 }
 0x13a   : > { %v393_v49 = vpop.permute.xlu1 %392  ;;  %v388_v50 = vpop.permute.xlu0 %387  ;;  %v410_v54 = vld [vmem:[#allocation2 + $0x10] sm:$0xff] }
 0x13b   : > { %v409_v51 = vld [vmem:[#allocation2 + $0x8] sm:$0xff]  ;;  %396 = vst.msk [vmem:[#allocation2 + $0x30] sm:$0xff] %vm395_vm5, %v393_v49 }
 0x13c   : > { %391 = vst.msk [vmem:[#allocation2 + $0x28] sm:$0xff] %vm390_vm6, %v388_v50  ;;  %436 = vmatpush1.bf16.msra.mxu0 %v409_v51 }
 0x13d   : > { %437 = vmatprep.subr.bf16.mxu0 %v1055_v4 }
 0x13e   : > { %v403_v52 = vpop.permute.xlu1 %402  ;;  %v398_v53 = vpop.permute.xlu0 %397  ;;  %v412_v56 = vld [vmem:[#allocation2 + $0x20] sm:$0xff] }
 0x13f   : > { %406 = vst.msk [vmem:[#allocation2 + $0x40] sm:$0xff] %vm405_vm7, %v403_v52  ;;  %v411_v55 = vld [vmem:[#allocation2 + $0x18] sm:$0xff] }
 0x140   : > { %401 = vst.msk [vmem:[#allocation2 + $0x38] sm:$0xff] %vm400_vm8, %v398_v53  ;;  %438 = vmatpush1.bf16.msra.mxu0 %v410_v54  ;;  %v890_v53 = vld [vmem:[%s1332_s6 + $0x10] sm:$0xff]  ;;  %v884_v54 = vld [vmem:[%s1330_s4 + $0x8] sm:$0xff] }
 0x141   : > { %439 = vmatprep.subr.bf16.mxu0 %v1055_v4 }
 0x142   : > { %v414_v58 = vld [vmem:[#allocation2 + $0x30] sm:$0xff] }
 0x143   : > { %v413_v57 = vld [vmem:[#allocation2 + $0x28] sm:$0xff] }
 0x144   : > { %440 = vmatpush1.bf16.msra.mxu0 %v411_v55  ;;  %v891_v55 = vld [vmem:[%s1332_s6 + $0x18] sm:$0xff] }
 0x145   : > { %441 = vmatprep.subr.bf16.mxu0 %v1055_v4 }
 0x146   : > { %v416_v60 = vld [vmem:[#allocation2 + $0x40] sm:$0xff] }
 0x147   : > { %v415_v59 = vld [vmem:[#allocation2 + $0x38] sm:$0xff] }
 0x148   : > { %442 = vmatpush1.bf16.msra.mxu0 %v412_v56  ;;  %v883_v56 = vld [vmem:[%s1329_s3 + $0x8] sm:$0xff] }
 0x149   : > { %443 = vmatprep.subr.bf16.mxu0 %v1055_v4 }
 0x14c   : > { %444 = vmatpush1.bf16.msra.mxu0 %v413_v57  ;;  %v886_v57 = vcombine.high %v883_v56, %v883_v56 }
 0x14d   : > { %445 = vmatprep.subr.bf16.mxu0 %v1055_v4 }
 0x14f   : > { %v421_v63 = vpop.permute.xlu0 %420  ;;  %v490_v18 = vpop.permute.xlu1 %489 }
 0x150   : > { %446 = vmatpush1.bf16.msra.mxu0 %v414_v58 }
 0x151   : > { %447 = vmatprep.subr.bf16.mxu0 %v1055_v4 }
 0x153   : > { %v495_v19 = vpop.permute.xlu0 %494  ;;  %v557_v20 = vpop.permute.xlu1 %556 }
 0x154   : > { %448 = vmatpush1.bf16.msra.mxu0 %v415_v59 }
 0x155   : > { %449 = vmatprep.subr.bf16.mxu0 %v1055_v4 }
 0x157   : > { %v562_v21 = vpop.permute.xlu0 %561  ;;  %v572_v29 = vpop.permute.xlu1 %571 }
 0x158   : > { %450 = vmatpush1.bf16.msra.mxu0 %v416_v60 }
 0x159   : > { %908 = vmatprep.subr.bf16.mxu0 %v1064_v62 }
 0x15b   : > { %466 = vmatmul.mubr.bf16.vlgmr.msra.gmra.mrb[0].mxu0 %v874_v61  ;;  %v577_v32 = vpop.permute.xlu0 %576 }
 0x15c   : > { %910 = vmatprep.mubr.msk.bf16.mxu0 %vm1065_vm9, %v1064_v62 }
 0x22e   : > { %v467_v0 = vpop.f32.mrb[0].mxu0 }
 0x22f   : > { %v468_v1 = vadd.f32 %v467_v0, %v421_v63  ;;  %v469_v2 = vpop.f32.mrb[1].mxu0 }
 0x230   : > { %v470_v3 = vpop.f32.mrb[2].mxu0 }
 0x231   : > { %v474_v5 = vmul.f32 %v468_v1, %v468_v1  ;;  %v471_v6 = vpop.f32.mrb[3].mxu0  ;;  %v473_v8 = vmul.f32 0.7978846, %v468_v1  ;;  %v478_v12 = vmul.f32 0.5, %v468_v1 }
 0x233   : > { %v475_v7 = vmul.f32 0.044715, %v474_v5 }
 0x235   : > { %v476_v9 = vadd.f32 1.0, %v475_v7 }
 0x237   : > { %v477_v10 = vmul.f32 %v476_v9, %v473_v8 }
 0x239   : > { %983 = vtanh.f32 %v477_v10 }
 0x243   : > { %v984_v11 = vpop.eup %983 }
 0x244   : > { %v480_v13 = vadd.f32 1.0, %v984_v11  ;;  %v885_v11 = vcombine.low %v883_v56, %v883_v56 }
 0x246   : > { %v481_v14 = vmul.f32 %v480_v13, %v478_v12 }
 0x248   : > { %v484_v15 = vpack.c.bf16 %v481_v14, %v481_v14 }
 0x24a   : > { %v508_v16 = vsel %vm506_vm10, %v484_v15, 0 }
 0x24b   : > { %903 = vmatpush3.bf16.msra.mxu1 %v508_v16 }
 0x24c   : > { %665 = vmatprep.subr.bf16.mxu1 %v1055_v4 }
 0x24e   : > { %905 = vmatmul.mubr.msk.bf16.vlgmr.msra.gmra.mrb[0].mxu1 %vm502_vm11, %v975_v17 }
 0x24f   : > { %887 = vmatprep.mubr.msk.bf16.mxu1 %vm429_vm0, %v886_v57 }
 0x321   : > { %v544_v22 = vpop.f32.mrb[0].mxu1 }
 0x322   : > { %v545_v23 = vadd.f32 %v544_v22, %v490_v18  ;;  %v906_v24 = vpop.f32.mrb[1].mxu1 }
 0x323   : > { %v547_v25 = vpop.f32.mrb[2].mxu1 }
 0x324   : > { %v564_v26 = vmul.f32 %v557_v20, %v545_v23  ;;  %v548_v27 = vadd.f32 %v547_v25, %v495_v19  ;;  %v907_v28 = vpop.f32.mrb[3].mxu1 }
 0x325   : > { %v978_v28 = vld [vmem:[%s1331_s5 + $0x8] sm:$0xff]  }
 0x326   : > { %v579_v30 = vadd.f32 %v572_v29, %v564_v26  ;;  %v565_v31 = vmul.f32 %v562_v21, %v548_v27 }
 0x328   : > { %v583_v33 = vmul.f32 %v579_v30, %v579_v30  ;;  %v580_v34 = vadd.f32 %v577_v32, %v565_v31  ;;  %v581_v37 = vmul.f32 0.7978846, %v579_v30  ;;  %v591_v47 = vmul.f32 0.5, %v579_v30 }
 0x32a   : > { %v585_v35 = vmul.f32 0.044715, %v583_v33  ;;  %v584_v36 = vmul.f32 %v580_v34, %v580_v34  ;;  %v582_v41 = vmul.f32 0.7978846, %v580_v34  ;;  %v592_v48 = vmul.f32 0.5, %v580_v34 }
 0x32c   : > { %v587_v38 = vadd.f32 1.0, %v585_v35  ;;  %v586_v39 = vmul.f32 0.044715, %v584_v36 }
 0x32e   : > { %v589_v40 = vmul.f32 %v587_v38, %v581_v37  ;;  %v588_v42 = vadd.f32 1.0, %v586_v39 }
 0x330   : > { %985 = vtanh.f32 %v589_v40  ;;  %v590_v43 = vmul.f32 %v588_v42, %v582_v41 }
 0x332   : > { %987 = vtanh.f32 %v590_v43 }
 0x33a   : > { %v986_v44 = vpop.eup %985 }
 0x33b   : > { %v595_v45 = vadd.f32 1.0, %v986_v44 }
 0x33c   : > { %v988_v46 = vpop.eup %987 }
 0x33d   : > { %v596_v49 = vadd.f32 1.0, %v988_v46  ;;  %v597_v50 = vmul.f32 %v595_v45, %v591_v47 }
 0x33f   : > { %v598_v51 = vmul.f32 %v596_v49, %v592_v48 }
 0x341   : > { %v599_v52 = vpack.c.bf16 %v598_v51, %v597_v50 }
 0x343   : > { %606 = vrot.lane.b32.xlu0 %v599_v52, %s1058_s19  ;;  %602 = vrot.lane.b32.xlu1 %v599_v52, %s1056_s17 }
 0x344   : > { %666 = vmatpush1.bf16.msra.mxu1 %v599_v52 }
 0x345   : > { %667 = vmatprep.subr.bf16.mxu1 %v1055_v4 }
 0x347   : > { %614 = vrot.lane.b32.xlu0 %v599_v52, %s1062_s23  ;;  %610 = vrot.lane.b32.xlu1 %v599_v52, %s1060_s21  ;;  %s1070_s21 = smov [#allocation4]  }
 0x348   : > { %s995_s14 = sshll.u32 %s1070_s21, 4  ;;  %s996_s14 = int_to_ptr.vmem [resolvable:$false] %s995_s14 }
 0x349   : > { %s997_s18 = scalar_lea.vmem %s996_s14, 512 }
 0x34b   : > { %623 = vrot.lane.b32.xlu0 %v599_v52, %s1066_s22  ;;  %618 = vrot.lane.b32.xlu1 %v599_v52, %s1067_s29  ;;  %s314_s22 = scalar_lea.vmem [#allocation4], %s1188_s15  ;;  %s1339_s15 = sand.u32 1, %s1045_s25  }
 0x34c   : > { %s798_s29 = sshll.u32 %s314_s22, 4  ;;  %s1284_s19 = scalar_lea.sflag [#allocation5], %s1339_s15  ;;  %s1275_s29 = int_to_ptr.vmem [resolvable:$true] %s798_s29 }
 0x34d   : > { %s991_s23 = scalar_lea.vmem %s1275_s29, 256  ;;  %p998_p2 = scmp.lt.s32.totalorder %s1275_s29, %s996_s14 }
 0x34e   : > { %p992_p13 = scmp.ne.s32.totalorder %s1275_s29, %s991_s23  ;;  %p999_p3 = scmp.lt.s32.totalorder %s997_s18, %s991_s23 }
 0x34f   : > { %633 = vrot.lane.b32.xlu0 %v599_v52, %s1068_s8  ;;  %628 = vrot.lane.b32.xlu1 %v599_v52, %s1069_s9  ;;  %s1338_s8 = sadd.s32 4294967295, %s1053_s27  }
 0x350   : > { %s895_s9 = sshll.u32 %s1338_s8, 7  ;;  %p993_p0 = pnand %p992_p13, %p1152_p6 }
 0x351   : > { %s1280_s17 = scalar_lea.hbm %s1333_s7, %s895_s9  ;;  %p1000_p4 = por %p999_p3, %p998_p2 }
 0x352   : > { %p994_p1 = pneg %p993_p0 }
 0x353   : > { %723 = vperm.xlu0 %971, %v890_v53   ;;  %653 = vperm.xlu1 %972, %v884_v54  }
 0x354   : > { %p1001_p5 = pnand %p1000_p4, %p994_p1 }
 0x357   : > { %728 = vperm.xlu1 %972, %v891_v55  }
 0x3b5   : > { %v607_v58 = vpop.permute.xlu0 %606  ;;  %v603_v59 = vpop.permute.xlu1 %602 }
 0x3b6   : > { %609 = vst.msk [vmem:[#allocation2 + $0x10] sm:$0xff] %vm385_vm3, %v607_v58 }
 0x3b7   : > { %605 = vst.msk [vmem:[#allocation2 + $0x8] sm:$0xff] %vm375_vm1, %v603_v59 }
 0x3b9   : > { %v615_v60 = vpop.permute.xlu0 %614  ;;  %v611_v61 = vpop.permute.xlu1 %610 }
 0x3ba   : > { %617 = vst.msk [vmem:[#allocation2 + $0x20] sm:$0xff] %vm405_vm7, %v615_v60 }
 0x3bb   : > { %613 = vst.msk [vmem:[#allocation2 + $0x18] sm:$0xff] %vm395_vm5, %v611_v61 }
 0x3bd   : > { %v624_v62 = vpop.permute.xlu0 %623  ;;  %v619_v63 = vpop.permute.xlu1 %618  ;;  %v642_v3 = vld [vmem:[#allocation2 + $0x10] sm:$0xff] }
 0x3be   : > { %v641_v0 = vld [vmem:[#allocation2 + $0x8] sm:$0xff]  ;;  %627 = vst.msk [vmem:[#allocation2 + $0x30] sm:$0xff] %vm626_vm12, %v624_v62 }
 0x3bf   : > { %622 = vst.msk [vmem:[#allocation2 + $0x28] sm:$0xff] %vm621_vm13, %v619_v63  ;;  %668 = vmatpush1.bf16.msra.mxu1 %v641_v0 }
 0x3c0   : > { %669 = vmatprep.subr.bf16.mxu1 %v1055_v4 }
 0x3c1   : > { %v634_v1 = vpop.permute.xlu0 %633  ;;  %v629_v2 = vpop.permute.xlu1 %628  ;;  %v644_v6 = vld [vmem:[#allocation2 + $0x20] sm:$0xff] }
 0x3c2   : > { %637 = vst.msk [vmem:[#allocation2 + $0x40] sm:$0xff] %vm636_vm14, %v634_v1  ;;  %v643_v5 = vld [vmem:[#allocation2 + $0x18] sm:$0xff] }
 0x3c3   : > { %632 = vst.msk [vmem:[#allocation2 + $0x38] sm:$0xff] %vm631_vm15, %v629_v2  ;;  %670 = vmatpush1.bf16.msra.mxu1 %v642_v3 }
 0x3c4   : > { %671 = vmatprep.subr.bf16.mxu1 %v1055_v4 }
 0x3c5   : > { %v646_v8 = vld [vmem:[#allocation2 + $0x30] sm:$0xff] }
 0x3c6   : > { %v645_v7 = vld [vmem:[#allocation2 + $0x28] sm:$0xff] }
 0x3c7   : > { %672 = vmatpush1.bf16.msra.mxu1 %v643_v5 }
 0x3c8   : > { %673 = vmatprep.subr.bf16.mxu1 %v1055_v4 }
 0x3c9   : > { %v648_v10 = vld [vmem:[#allocation2 + $0x40] sm:$0xff] }
 0x3ca   : > { %v647_v9 = vld [vmem:[#allocation2 + $0x38] sm:$0xff] }
 0x3cb   : > { %674 = vmatpush1.bf16.msra.mxu1 %v644_v6 }
 0x3cc   : > { %675 = vmatprep.subr.bf16.mxu1 %v1055_v4 }
 0x3cf   : > { %676 = vmatpush1.bf16.msra.mxu1 %v645_v7 }
 0x3d0   : > { %677 = vmatprep.subr.bf16.mxu1 %v1055_v4 }
 0x3d2   : > { %v654_v12 = vpop.permute.xlu1 %653  ;;  %v724_v29 = vpop.permute.xlu0 %723 }
 0x3d3   : > { %678 = vmatpush1.bf16.msra.mxu1 %v646_v8 }
 0x3d4   : > { %679 = vmatprep.subr.bf16.mxu1 %v1055_v4 }
 0x3d6   : > { %v729_v33 = vpop.permute.xlu1 %728 }
 0x3d7   : > { %680 = vmatpush1.bf16.msra.mxu1 %v647_v9 }
 0x3d8   : > { %681 = vmatprep.subr.bf16.mxu1 %v1055_v4 }
 0x3db   : > { %682 = vmatpush1.bf16.msra.mxu1 %v648_v10 }
 0x3de   : > { %698 = vmatmul.mubr.bf16.vlgmr.msra.gmra.mrb[4].mxu1 %v885_v11 }
 0x4b1   : > { %v699_v13 = vpop.f32.mrb[4].mxu1 }
 0x4b2   : > { %v700_v14 = vadd.f32 %v699_v13, %v654_v12  ;;  %v701_v15 = vpop.f32.mrb[5].mxu1 }
 0x4b3   : > { %v702_v16 = vpop.f32.mrb[6].mxu1 }
 0x4b4   : > { %v706_v17 = vmul.f32 %v700_v14, %v700_v14  ;;  %v703_v18 = vpop.f32.mrb[7].mxu1  ;;  %v705_v20 = vmul.f32 0.7978846, %v700_v14  ;;  %v710_v4 = vmul.f32 0.5, %v700_v14 }
 0x4b6   : > { %v707_v19 = vmul.f32 0.044715, %v706_v17 }
 0x4b8   : > { %v708_v21 = vadd.f32 1.0, %v707_v19 }
 0x4ba   : > { %v709_v22 = vmul.f32 %v708_v21, %v705_v20 }
 0x4bc   : > { %989 = vtanh.f32 %v709_v22 }
 0x4c6   : > { %v990_v23 = vpop.eup %989 }
 0x4c7   : > { %v712_v24 = vadd.f32 1.0, %v990_v23 }
 0x4c9   : > { %v713_v25 = vmul.f32 %v712_v24, %v710_v4 }
 0x4cb   : > { %v717_v26 = vpack.c.bf16 %v713_v25, %v713_v25 }
 0x4cd   : > { %v740_v27 = vsel %vm506_vm10, %v717_v26, 0 }
 0x4ce   : > { %909 = vmatpush3.bf16.msra.mxu0 %v740_v27 }
 0x4d1   : > { %911 = vmatmul.mubr.msk.bf16.vlgmr.msra.gmra.mrb[4].mxu0 %vm502_vm11, %v978_v28 }
 0x5a4   : > { %v776_v30 = vpop.f32.mrb[4].mxu0 }
 0x5a5   : > { %v777_v31 = vadd.f32 %v776_v30, %v724_v29  ;;  %v912_v32 = vpop.f32.mrb[5].mxu0 }
 0x5a6   : > { %v779_v34 = vpop.f32.mrb[6].mxu0 }
 0x5a7   : > { %783 = vst [vmem:[%s314_s22] sm:$0xff] %v777_v31  ;;  %v780_v35 = vadd.f32 %v779_v34, %v729_v33  ;;  %v913_v36 = vpop.f32.mrb[7].mxu0 }
 0x5a9   : > { %784 = vst [vmem:[%s314_s22 + $0x8] sm:$0xff] %v780_v35 }
 0x5aa   : > { %1004 = shalt.err (!%p1001_p5)
}
 0x5ab   : > { %s1005_s28 = scalar_lea.hbm %s1280_s17, 256  ;;  %s1009_s8 = scalar_lea.hbm %s1333_s7, 512 }
 0x5ac   : > { %p1006_p7 = scmp.ne.s32.totalorder %s1280_s17, %s1005_s28  ;;  %p1010_p12 = scmp.lt.u32.totalorder %s1280_s17, %s1333_s7 }
 0x5ad   : > { %p1011_p13 = scmp.lt.u32.totalorder %s1009_s8, %s1005_s28  ;;  %p1013_p1 = scmp.lt.u32.totalorder %s1005_s28, %s1280_s17 }
 0x5ae   : > { %p1007_p10 = pnand %p1006_p7, %p1152_p6 }
 0x5af   : > { %p1012_p0 = por %p1011_p13, %p1010_p12 }
 0x5b0   : > { %p1008_p11 = pneg %p1007_p10 }
 0x5b1   : > { %p1014_p2 = por %p1013_p1, %p1012_p0 }
 0x5b3   : > { %p1015_p3 = pnand %p1014_p2, %p1008_p11 }
 0x5b5   : > { %1018 = shalt.err (!%p1015_p3)
}
 0x5b6   : > { %s1071_s16 = smov 128   ;;  %s1072_s15 = smov 256  }
 0x5b7   : > { %s1073_s23 = smov 8  }
 0x5b8   : > { %914 = dma.vmem_to_hbm [thread:$0]  (%p1152_p6), %s1275_s29, 256, %s1280_s17, %s1284_s19, %s1071_s16, %s1072_s15, %s1073_s23  }
 0x5b9 PF: > { %s813_s21 = sand.u32 1, %s1041_s24   ;;  %p917_p4 = pnand %p868_p9, %p1156_p8 }
 0x5ba   : > { %s814_s14 = scalar_lea.sflag [#allocation5], %s813_s21 }
 0x5bb   : > { %1036 = dma.done.wait (!%p917_p4), %s814_s14, 256  }
 0x5bc   : > { %1038 = vsyncadd (!%p917_p4), %s814_s14, 4294967040  ;;  %p17_p5 = scmp.ge.s32.totalorder %s1137_s30, 4   ;;  %s1340_s24 = smov %s1045_s25 }
 0x5bd   : > { %s1341_s25 = smov %s1049_s26  ;;  %s1342_s26 = smov %s1150_s10 }
 0x5be   : > { %s1343_s27 = smov %s1137_s30  ;;  %19 = sbr.rel (!%p17_p5) target bundleno = 3 (0x3), region = 132 }
 0x5c5   :  { %819 = vsyncpa [#allocation5], 1 }
 0x5c6   :  { %821 = vsyncpa [#allocation5 + $0x1], 1 }

</bundles_post_ra>
